<compile_context>
chip_gen: v5e
topology: v5e:2x2
jax: 0.10.0
libtpu: 0.0.40
codegen_flags: <defaults>
</compile_context>

<pallas_src>
import functools

import jax
import jax.numpy as jnp
from jax.experimental import pallas as pl
from jax.experimental.pallas import tpu as pltpu


def _round_up(x, m):
    return -(-x // m) * m


VMEM_LIMIT = 48 * 1024 * 1024   # v7x-safe scoped limit (64 MiB physical)


# ----------------------------------------------------------------------------
# Pallas kernels
# ----------------------------------------------------------------------------
def _mm_bias_kernel(a_ref, b_ref, bias_ref, o_ref, *, activation):
    """out = act(a @ b + bias); single K block, f32 accumulate + f32 epilogue."""
    acc = jnp.dot(a_ref[...], b_ref[...], preferred_element_type=jnp.float32)
    out = acc + bias_ref[...]
    if activation == "relu":
        out = jnp.maximum(out, 0.0)
    o_ref[...] = out.astype(o_ref.dtype)


def _mm_bias_res_kernel(a_ref, b_ref, bias_ref, res_ref, o_ref):
    """out = relu(a @ b + bias + residual): fused ResNet bottleneck epilogue."""
    acc = jnp.dot(a_ref[...], b_ref[...], preferred_element_type=jnp.float32)
    out = acc + bias_ref[...] + res_ref[...].astype(jnp.float32)
    o_ref[...] = jnp.maximum(out, 0.0).astype(o_ref.dtype)


def _conv_taps_kernel(x_hbm, w_ref, b_ref, o_ref, xbuf, sem, *,
                      taps, kw, wp, tm, relu):
    """Direct stride-1 conv: accumulate kh*kw row-shifted taps on the MXU.

    x_hbm is the zero-padded activation flattened to rows (HBM, pl.ANY); one
    DMA brings (tm + margin) rows into VMEM and every tap is a contiguous
    static row-slice of that buffer -- no im2col matrix in HBM.
    """
    i = pl.program_id(0)
    rows = xbuf.shape[0]
    start = pl.multiple_of(i * tm, 8)
    cp = pltpu.make_async_copy(x_hbm.at[pl.ds(start, rows), :], xbuf, sem.at[0])
    cp.start()
    cp.wait()
    acc = jnp.zeros((tm, o_ref.shape[1]), jnp.float32)
    for t in range(taps):                       # static unroll (<= 9 taps)
        off = (t // kw) * wp + (t % kw)
        a = xbuf[off:off + tm, :]
        acc = acc + jnp.dot(a, w_ref[t], preferred_element_type=jnp.float32)
    acc = acc + b_ref[...]
    if relu:
        acc = jnp.maximum(acc, 0.0)
    o_ref[...] = acc.astype(o_ref.dtype)


def _rowmax3_kernel(x_ref, o_ref):
    """Row-window (H) max of the column-maxed map; stride-2 window of 3."""
    _, ho, wo, c = o_ref.shape
    x = x_ref[0]                                # (h+2, wo, c)
    a = x[0:2 * ho].reshape(ho, 2, wo, c)       # even / odd row phases
    b = x[2:2 * ho + 2].reshape(ho, 2, wo, c)
    o_ref[0] = jnp.maximum(jnp.maximum(a[:, 0], a[:, 1]), b[:, 0])


def _mean_pool_kernel(x_ref, o_ref):
    o_ref[...] = jnp.mean(x_ref[...].astype(jnp.float32), axis=1, keepdims=True)


# ----------------------------------------------------------------------------
# matmul wrapper (1x1 convs, strided-conv im2col fallback, detect head)
# ----------------------------------------------------------------------------
def pallas_matmul_bias(a, b, bias, residual=None, activation="none",
                       out_dtype=jnp.float32, tm=256, tn=256):
    """act(a @ b + bias [+ residual]); a:(M,K) bf16, b:(K,N) bf16, bias f32.

    K (<= 4608 in this network) is always ONE full block (pre-padded offline),
    so no k grid axis / accumulator scratch and no ragged-K garbage can enter
    the MXU accumulation.  M/N tiles are chosen so the grid has >= 2 blocks
    where shapes allow (keeps both v7x TensorCores busy).
    """
    M, K = a.shape
    K2, N = b.shape
    assert K == K2, (K, K2)
    bias2d = bias.reshape(1, N)

    tm = min(tm, M)          # full-dim blocks are always legal
    tn = min(tn, N)
    if pl.cdiv(M, tm) * pl.cdiv(N, tn) < 2:      # guarantee >= 2 grid tiles
        if N >= 256 and (N // 2) % 128 == 0:
            tn = N // 2
        elif M >= 16:
            tm = _round_up(-(-M // 2), 8)
    grid = (pl.cdiv(M, tm), pl.cdiv(N, tn))

    in_specs = [
        pl.BlockSpec((tm, K), lambda i, j: (i, 0)),
        pl.BlockSpec((K, tn), lambda i, j: (0, j)),
        pl.BlockSpec((1, tn), lambda i, j: (0, j)),
    ]
    operands = [a, b, bias2d]
    if residual is not None:
        in_specs.append(pl.BlockSpec((tm, tn), lambda i, j: (i, j)))
        operands.append(residual)
        kernel = _mm_bias_res_kernel
    else:
        kernel = functools.partial(_mm_bias_kernel, activation=activation)

    out_itemsize = jnp.dtype(out_dtype).itemsize
    bytes_accessed = (a.size * a.dtype.itemsize + b.size * b.dtype.itemsize
                      + bias2d.size * 4 + M * N * out_itemsize)
    if residual is not None:
        bytes_accessed += residual.size * residual.dtype.itemsize

    return pl.pallas_call(
        kernel,
        out_shape=jax.ShapeDtypeStruct((M, N), out_dtype),
        grid_spec=pltpu.PrefetchScalarGridSpec(
            num_scalar_prefetch=0,
            grid=grid,
            in_specs=in_specs,
            out_specs=pl.BlockSpec((tm, tn), lambda i, j: (i, j)),
        ),
        compiler_params=pltpu.CompilerParams(
            dimension_semantics=("parallel", "parallel"),
            vmem_limit_bytes=VMEM_LIMIT),
        cost_estimate=pl.CostEstimate(
            flops=2 * M * K * N, transcendentals=0,
            bytes_accessed=int(bytes_accessed)),
    )(*operands)


# ----------------------------------------------------------------------------
# direct stride-1 kxk conv (in-kernel patch accumulation, no im2col)
# ----------------------------------------------------------------------------
def conv_direct_s1(x, p, relu):
    kh, kw = p["kh"], p["kw"]
    ph = kh // 2
    n, h, w, c = x.shape
    hp, wp = h + 2 * ph, w + 2 * ph
    cout = p["w"].shape[-1]

    xp = jnp.pad(x, ((0, 0), (ph, ph), (ph, ph), (0, 0)))
    m_pad = n * hp * wp                       # outputs live in the padded frame
    margin = (kh - 1) * wp + (kw - 1)         # max tap row-offset
    margin_pad = _round_up(margin, 8)

    tm = min(256, _round_up(m_pad, 8))
    tn = min(256, cout)
    if pl.cdiv(m_pad, tm) * (cout // tn) < 2:     # >= 2 tiles for v7x megacore
        if cout >= 256 and (cout // 2) % 128 == 0:
            tn = cout // 2
        elif m_pad >= 16:
            tm = _round_up(-(-m_pad // 2), 8)
    m_tiles = pl.cdiv(m_pad, tm)
    n_tiles = cout // tn
    mo = m_tiles * tm
    rows_needed = mo + margin_pad

    x_flat = xp.reshape(m_pad, c)                 # contiguous -> free reshape
    x_flat = jnp.pad(x_flat, ((0, rows_needed - m_pad), (0, 0)))

    kernel = functools.partial(_conv_taps_kernel, taps=kh * kw, kw=kw, wp=wp,
                               tm=tm, relu=relu)
    bytes_accessed = (x_flat.size * 2 * n_tiles + p["w"].size * 2
                      + p["b"].size * 4 + mo * cout * 2)
    out = pl.pallas_call(
        kernel,
        out_shape=jax.ShapeDtypeStruct((mo, cout), jnp.bfloat16),
        grid_spec=pltpu.PrefetchScalarGridSpec(
            num_scalar_prefetch=0,
            grid=(m_tiles, n_tiles),
            in_specs=[
                pl.BlockSpec(memory_space=pl.ANY),                     # act (HBM)
                pl.BlockSpec((kh * kw, c, tn), lambda i, j: (0, 0, j)),
                pl.BlockSpec((1, tn), lambda i, j: (0, j)),
            ],
            out_specs=pl.BlockSpec((tm, tn), lambda i, j: (i, j)),
            scratch_shapes=[
                pltpu.VMEM((tm + margin_pad, c), jnp.bfloat16),
                pltpu.SemaphoreType.DMA((1,)),
            ],
        ),
        compiler_params=pltpu.CompilerParams(
            dimension_semantics=("parallel", "parallel"),
            vmem_limit_bytes=VMEM_LIMIT),
        cost_estimate=pl.CostEstimate(
            flops=2 * mo * kh * kw * c * cout, transcendentals=0,
            bytes_accessed=int(bytes_accessed)),
    )(x_flat, p["w"], p["b"])
    # valid outputs sit at offsets [0,h) x [0,w) of the padded frame
    return out[:m_pad].reshape(n, hp, wp, cout)[:, :h, :w, :]


# ----------------------------------------------------------------------------
# conv / pool wrappers
# ----------------------------------------------------------------------------
def _im2col(x, kh, kw, stride, pad, k_pad=0):
    # TODO(synk): only used for the 7x7 s2 stem and the three stride-2 3x3
    # convs; a phase-split direct kernel would remove this last expansion.
    n, h, w, c = x.shape
    xp = jnp.pad(x, ((0, 0), (pad, pad), (pad, pad), (0, 0)))
    ho = (h + 2 * pad - kh) // stride + 1
    wo = (w + 2 * pad - kw) // stride + 1
    cols = []
    for i in range(kh):
        for j in range(kw):
            cols.append(xp[:, i:i + stride * ho:stride,
                           j:j + stride * wo:stride, :])
    if k_pad:  # lane-align K without a second full-copy pad pass
        cols.append(jnp.zeros((n, ho, wo, k_pad), x.dtype))
    patches = jnp.concatenate(cols, axis=-1)
    return patches.reshape(n * ho * wo, patches.shape[-1]), (n, ho, wo)


def conv_bn(x, p, stride, pad, relu, residual=None):
    """Conv (no bias) + folded eval-mode BatchNorm (+ReLU / +fused residual)."""
    kh, kw = p["kh"], p["kw"]
    if kh == 1 and kw == 1:
        xs = x if stride == 1 else x[:, ::stride, ::stride, :]
        n, ho, wo, cin = xs.shape
        a = xs.reshape(n * ho * wo, cin)          # contiguous -> free reshape
        res = None
        if residual is not None:
            res = residual.reshape(n * ho * wo, residual.shape[-1])
        out = pallas_matmul_bias(a, p["w"], p["b"], residual=res,
                                 activation="relu" if relu else "none",
                                 out_dtype=jnp.bfloat16)
        return out.reshape(n, ho, wo, -1)
    if stride == 1 and p.get("direct"):
        assert pad == kh // 2 and residual is None
        return conv_direct_s1(x, p, relu)
    assert residual is None
    cin = x.shape[-1]
    k_pad = p["w"].shape[0] - kh * kw * cin
    a, (n, ho, wo) = _im2col(x, kh, kw, stride, pad, k_pad=k_pad)
    out = pallas_matmul_bias(a, p["w"], p["b"],
                             activation="relu" if relu else "none",
                             out_dtype=jnp.bfloat16)
    return out.reshape(n, ho, wo, -1)


def maxpool_3x3_s2_p1(x):
    n, h, w, c = x.shape
    ho = (h + 2 - 3) // 2 + 1
    wo = (w + 2 - 3) // 2 + 1
    xp = jnp.pad(x, ((0, 0), (1, 1), (1, 1), (0, 0)),
                 constant_values=-jnp.inf)
    # Column (W) window max: fused XLA elementwise maximum tree (no 9x stack).
    colmax = jnp.maximum(
        jnp.maximum(xp[:, :, 0:2 * wo:2, :], xp[:, :, 1:1 + 2 * wo:2, :]),
        xp[:, :, 2:2 + 2 * wo:2, :])                     # (n, h+2, wo, c)
    # Row (H) window max: one Pallas kernel on colmax (no strided-slice copies).
    return pl.pallas_call(
        _rowmax3_kernel,
        out_shape=jax.ShapeDtypeStruct((n, ho, wo, c), x.dtype),
        grid_spec=pltpu.PrefetchScalarGridSpec(
            num_scalar_prefetch=0,
            grid=(n,),
            in_specs=[pl.BlockSpec((1, h + 2, wo, c), lambda i: (i, 0, 0, 0))],
            out_specs=pl.BlockSpec((1, ho, wo, c), lambda i: (i, 0, 0, 0)),
        ),
        compiler_params=pltpu.CompilerParams(
            dimension_semantics=("parallel",)),
    )(colmax)


def adaptive_avgpool_1x1(x):
    n, h, w, c = x.shape
    xf = x.reshape(n, h * w, c)
    out = pl.pallas_call(
        _mean_pool_kernel,
        out_shape=jax.ShapeDtypeStruct((n, 1, c), jnp.float32),
        grid_spec=pltpu.PrefetchScalarGridSpec(
            num_scalar_prefetch=0,
            grid=(n,),
            in_specs=[pl.BlockSpec((1, h * w, c), lambda i: (i, 0, 0))],
            out_specs=pl.BlockSpec((1, 1, c), lambda i: (i, 0, 0)),
        ),
        compiler_params=pltpu.CompilerParams(
            dimension_semantics=("parallel",)),
    )(xf)
    return out.reshape(n, c)


# ----------------------------------------------------------------------------
# deterministic parameter construction (synthetic, PRNGKey(0))
# ----------------------------------------------------------------------------
class KeyGen:
    def __init__(self, seed):
        self._key = jax.random.PRNGKey(seed)

    def __call__(self):
        self._key, sub = jax.random.split(self._key)
        return sub


def make_conv_bn(kg, cin, cout, kh, kw, stride=1, cin_phys=None, cout_phys=None):
    """Conv weight + folded BN, zero-padded to lane-dense physical channels."""
    cin_phys = cin if cin_phys is None else cin_phys
    cout_phys = cout if cout_phys is None else cout_phys
    fan_in = cin * kh * kw
    w = jax.random.normal(kg(), (cout, cin, kh, kw), jnp.float32)
    w = w * (2.0 / fan_in) ** 0.5
    gamma = 1.0 + 0.1 * jax.random.normal(kg(), (cout,), jnp.float32)
    beta = 0.05 * jax.random.normal(kg(), (cout,), jnp.float32)
    mean = 0.05 * jax.random.normal(kg(), (cout,), jnp.float32)
    var = 1.0 + 0.1 * jax.random.uniform(kg(), (cout,), jnp.float32)
    scale = gamma / jnp.sqrt(var + 1e-5)
    shift = beta - mean * scale
    w = w * scale[:, None, None, None]                    # fold BN scale
    # zero-pad to lane-dense physical channel counts (padded lanes stay 0)
    w = jnp.pad(w, ((0, cout_phys - cout), (0, cin_phys - cin), (0, 0), (0, 0)))
    shift = jnp.pad(shift, (0, cout_phys - cout))
    whwio = jnp.transpose(w, (2, 3, 1, 0))                # (kh, kw, cin, cout)
    p = {"kh": kh, "kw": kw,
         "b": shift.reshape(1, cout_phys).astype(jnp.float32)}
    if kh == 1 and kw == 1:
        p["w"] = whwio.reshape(cin_phys, cout_phys).astype(jnp.bfloat16)
    elif stride == 1:                                     # direct (tap) layout
        p["w"] = whwio.reshape(kh * kw, cin_phys, cout_phys).astype(jnp.bfloat16)
        p["direct"] = True
    else:                                                 # im2col layout
        wm = whwio.reshape(kh * kw * cin_phys, cout_phys)
        kp = _round_up(wm.shape[0], 128)
        wm = jnp.pad(wm, ((0, kp - wm.shape[0]), (0, 0)))
        p["w"] = wm.astype(jnp.bfloat16)
    return p


def make_bottleneck(kg, cin_phys, cin, planes, stride):
    pl4 = planes * 4
    pp = max(planes, 128)                                 # lane-dense planes
    p = {
        "c1": make_conv_bn(kg, cin, planes, 1, 1, cin_phys=cin_phys, cout_phys=pp),
        "c2": make_conv_bn(kg, planes, planes, 3, 3, stride=stride,
                           cin_phys=pp, cout_phys=pp),
        "c3": make_conv_bn(kg, planes, pl4, 1, 1, cin_phys=pp, cout_phys=pl4),
        "stride": stride,
    }
    if stride != 1 or cin != pl4:
        p["down"] = make_conv_bn(kg, cin, pl4, 1, 1,
                                 cin_phys=cin_phys, cout_phys=pl4)
    return p


def make_resnet50(kg):
    params = {"conv1": make_conv_bn(kg, 3, 64, 7, 7, stride=2,
                                    cin_phys=3, cout_phys=128),
              "layers": []}
    cfg = [(64, 3, 1), (128, 4, 2), (256, 6, 2), (512, 3, 2)]
    cin, cin_phys = 64, 128
    for planes, blocks, stride in cfg:
        layer = []
        for b in range(blocks):
            layer.append(make_bottleneck(kg, cin_phys, cin, planes,
                                         stride if b == 0 else 1))
            cin = planes * 4
            cin_phys = cin
        params["layers"].append(layer)
    return params


def make_linear(kg, fin, fout):
    bound = 1.0 / fin ** 0.5
    w = jax.random.uniform(kg(), (fout, fin), jnp.float32, -bound, bound)
    b = jax.random.uniform(kg(), (fout,), jnp.float32, -bound, bound)
    fp = _round_up(fout, 256)                             # align N once, offline
    w_mat = jnp.pad(w.T, ((0, 0), (0, fp - fout)))
    b_row = jnp.pad(b.reshape(1, fout), ((0, 0), (0, fp - fout)))
    return {"w": w_mat.astype(jnp.bfloat16),
            "b": b_row.astype(jnp.float32), "n_out": fout}


def make_yolo_params(seed=0):
    # TODO(synk): pretrained torchvision ResNet50 weights cannot be loaded
    # here; deterministic synthetic weights are used instead.
    kg = KeyGen(seed)
    return {
        "resnet": make_resnet50(kg),
        "detect": [
            make_linear(kg, 2048, 2048),
            make_linear(kg, 2048, 2048),
            make_linear(kg, 2048, 13 * 13 * 5),
        ],
    }


# ----------------------------------------------------------------------------
# forward pass (mirrors Yolo_v1_2.forward)
# ----------------------------------------------------------------------------
def bottleneck_forward(x, p):
    out = conv_bn(x, p["c1"], 1, 0, relu=True)
    out = conv_bn(out, p["c2"], p["stride"], 1, relu=True)
    if "down" in p:
        identity = conv_bn(x, p["down"], p["stride"], 0, relu=False)
    else:
        identity = x
    # conv3 + folded BN + residual add + ReLU fused into one matmul epilogue.
    return conv_bn(out, p["c3"], 1, 0, relu=False, residual=identity)


def yolo_v1_2_forward(params, x_nchw):
    # NOTE: BatchNorm uses eval-mode running stats (folded into the convs).
    x = jnp.transpose(x_nchw, (0, 2, 3, 1)).astype(jnp.bfloat16)   # NHWC bf16

    # ResNet50 stem
    x = conv_bn(x, params["resnet"]["conv1"], stride=2, pad=3, relu=True)
    x = maxpool_3x3_s2_p1(x)
    # layer1..layer4
    for layer in params["resnet"]["layers"]:
        for block in layer:
            x = bottleneck_forward(x, block)

    # avgpool((1,1)) + flatten
    feat = adaptive_avgpool_1x1(x)                                 # (B, 2048) f32

    # detect head: weight-streaming matmuls (N split into 256-wide tiles).
    # TODO(synk): fuse all three layers into one pallas_call with the tiny
    # (B, 2048) activation resident in VMEM to remove inter-layer launch gaps.
    d = params["detect"]
    h = feat.astype(jnp.bfloat16)
    h = pallas_matmul_bias(h, d[0]["w"], d[0]["b"], activation="relu",
                           out_dtype=jnp.bfloat16)
    h = pallas_matmul_bias(h, d[1]["w"], d[1]["b"], activation="relu",
                           out_dtype=jnp.bfloat16)
    y = pallas_matmul_bias(h, d[2]["w"], d[2]["b"], activation="none",
                           out_dtype=jnp.float32)
    y = y[:, :d[2]["n_out"]]

    b = y.shape[0]
    return y.reshape(b, 13, 13, 5)


# ----------------------------------------------------------------------------
if __name__ == "__main__":
    params = make_yolo_params(seed=0)

    # small but valid input for a 32x-downsampling backbone: (B=2, C=3, 64, 64)
    x = jax.random.normal(jax.random.PRNGKey(0), (2, 3, 64, 64), jnp.float32)

    out = yolo_v1_2_forward(params, x)
    out = jax.block_until_ready(out)

    assert out.shape == (2, 13, 13, 5), out.shape
    assert bool(jnp.all(jnp.isfinite(out))), "non-finite output"
    print("KERNEL_OK")
</pallas_src>

<mosaic_0001>
module attributes {stable_mosaic.version = 11 : i64} {
  func.func @_mm_bias_kernel(%arg0: i32, %arg1: i32, %arg2: memref<256x256xbf16, #tpu.memory_space<vmem>>, %arg3: memref<256x128xbf16, #tpu.memory_space<vmem>>, %arg4: memref<1x128xf32, #tpu.memory_space<vmem>>, %arg5: memref<256x128xbf16, #tpu.memory_space<vmem>>) attributes {dimension_semantics = [#tpu.dimension_semantics<parallel>, #tpu.dimension_semantics<parallel>], iteration_bounds = array<i64: 8, 1>, scalar_prefetch = 0 : i64, scratch_operands = 0 : i64, tpu.core_type = #tpu.core_type<tc>, window_params = [{transform_indices = @transform_0, window_bounds = array<i64: 256, 256>}, {transform_indices = @transform_1, window_bounds = array<i64: 256, 128>}, {transform_indices = @transform_2, window_bounds = array<i64: 1, 128>}, {transform_indices = @transform_3, window_bounds = array<i64: 256, 128>}]} {
    %c0 = arith.constant 0 : index
    %c0_0 = arith.constant 0 : index
    %0 = vector.load %arg2[%c0, %c0_0] : memref<256x256xbf16, #tpu.memory_space<vmem>>, vector<256x256xbf16>
    %c0_1 = arith.constant 0 : index
    %c0_2 = arith.constant 0 : index
    %1 = vector.load %arg3[%c0_1, %c0_2] : memref<256x128xbf16, #tpu.memory_space<vmem>>, vector<256x128xbf16>
    %cst = arith.constant dense<0.000000e+00> : vector<256x128xf32>
    %2 = tpu.matmul %0, %1, %cst {dimension_numbers = #tpu.dot_dimension_numbers<[1], [0], [0], [1], [0, 0, 1, 1], [], []>} : vector<256x256xbf16>, vector<256x128xbf16>, vector<256x128xf32> -> vector<256x128xf32>
    %c0_3 = arith.constant 0 : index
    %c0_4 = arith.constant 0 : index
    %3 = vector.load %arg4[%c0_3, %c0_4] : memref<1x128xf32, #tpu.memory_space<vmem>>, vector<1x128xf32>
    %4 = vector.broadcast %3 : vector<1x128xf32> to vector<256x128xf32>
    %5 = arith.addf %2, %4 : vector<256x128xf32>
    %cst_5 = arith.constant 0.000000e+00 : f32
    %6 = vector.broadcast %cst_5 : f32 to vector<256x128xf32>
    %7 = arith.maximumf %5, %6 : vector<256x128xf32>
    %8 = arith.truncf %7 : vector<256x128xf32> to vector<256x128xbf16>
    %c0_6 = arith.constant 0 : index
    %c0_7 = arith.constant 0 : index
    %9 = vector.load %arg5[%c0_6, %c0_7] : memref<256x128xbf16, #tpu.memory_space<vmem>>, vector<256x128xbf16>
    tpu.vector_store %arg5[%c0_6, %c0_7], %8 {strides = array<i32>} : memref<256x128xbf16, #tpu.memory_space<vmem>>, vector<256x128xbf16>,
    return
  }
  func.func @transform_0(%arg0: i32, %arg1: i32) -> (i32, i32) {
    %c0_i32 = arith.constant 0 : i32
    %c0_i32_0 = arith.constant 0 : i32
    return %arg0, %c0_i32 : i32, i32
  }
  func.func @transform_1(%arg0: i32, %arg1: i32) -> (i32, i32) {
    %c0_i32 = arith.constant 0 : i32
    %c0_i32_0 = arith.constant 0 : i32
    return %c0_i32, %arg1 : i32, i32
  }
  func.func @transform_2(%arg0: i32, %arg1: i32) -> (i32, i32) {
    %c0_i32 = arith.constant 0 : i32
    %c0_i32_0 = arith.constant 0 : i32
    return %c0_i32, %arg1 : i32, i32
  }
  func.func @transform_3(%arg0: i32, %arg1: i32) -> (i32, i32) {
    %c0_i32 = arith.constant 0 : i32
    return %arg0, %arg1 : i32, i32
  }
}

</mosaic_0001>

<bundles_post_ra>
// kernel: tpu_custom_call.1
= control target key start
LH: loop header
LB: loop body
LE: loop exit
PB: predicated region body
PF: predicated region fallthrough
CT: control target
= control target key end

     0   :  { %s1866_s0 = inlined_call_operand.hbm [shape: bf16[2048,256], index: 0, kind: input, shape index: {}]   ;;  %s1867_s1 = inlined_call_operand.hbm [shape: bf16[256,128], index: 1, kind: input, shape index: {}]   ;;  %s1868_s2 = inlined_call_operand.vmem [shape: f32[1,128], index: 2, kind: input, shape index: {}]   ;;  %s1869_s3 = inlined_call_operand.hbm [shape: bf16[2048,128], index: 3, kind: output, shape index: {}]  }
   0x1   :  { %1870 = sst [smem:[#allocation11_spill]] %s1867_s1 }
   0x2   :  { %8 = vsyncpa [#allocation3], 0 }
   0x3   :  { %10 = vsyncpa [#allocation3 + $0x1], 0 }
   0x4   :  { %11 = vsyncpa [#allocation6], 0 }
   0x5   :  { %12 = vsyncpa [#allocation4], 0 }
   0x6   :  { %14 = vsyncpa [#allocation4 + $0x1], 0  ;;  %s1596_s12 = smov 0   ;;  %s1598_s13 = smov 0  }
   0x7   :  { %s1600_s14 = smov 0   ;;  %s1602_s15 = smov 0  }
   0x8   :  { %s1604_s16 = smov 0   ;;  %s1606_s17 = smov 0  }
   0x9 LB: > { %s968_s18 = sadd.s32 4294967295, %s1567_s17   ;;  %s969_s19 = sadd.s32 4294967294, %s1567_s17   ;;  %s1567_s17 = sphi %s1606_s17, %s20_s17   ;;  %s1563_s16 = sphi %s1604_s16, %s1883_s16   ;;  %s1559_s15 = sphi %s1602_s15, %s1882_s15   ;;  %s1555_s14 = sphi %s1600_s14, %s1881_s14   ;;  %s1551_s13 = sphi %s1598_s13, %s1880_s13   ;;  %s1547_s12 = sphi %s1596_s12, %s1879_s12  }
   0xa   : > { %p52_p0 = scmp.ne.s32.totalorder %s1551_s13, %s1547_s12  ;;  %p1630_p1 = scmp.eq.s32.totalorder %s968_s18, 0 }
   0xb   : > { %p1634_p2 = scmp.eq.s32.totalorder %s968_s18, 7  ;;  %p136_p3 = scmp.eq.s32.totalorder %s969_s19, 7 }
   0xc   : > { %p1640_p4 = por %p1630_p1, %p52_p0  ;;  %p970_p5 = scmp.ge.s32.totalorder %s1567_s17, 1 }
   0xd   : > { %p1645_p6 = por %p136_p3, %p52_p0  ;;  %p143_p7 = scmp.lt.s32.totalorder %s1567_s17, 9 }
   0xe   : > { %s1875_s1 = sld [smem:[#allocation11_spill]]  ;;  %s1569_s28 = smov [#allocation5]  }
   0xf   : > { %p1653_p8 = pnand %p970_p5, %p143_p7  ;;  %s158_s29 = sshll.u32 %s1569_s28, 4  ;;  %s159_s29 = int_to_ptr.vmem [resolvable:$true] %s158_s29 }
  0x10   : > { %s1570_s30 = smov 64   ;;  %s1571_s4 = smov 4  }
  0x11   : > { %p1349_p9 = pneg %p1653_p8  ;;  %s32_s5 = sadd.s32 1, %s1563_s16 }
  0x12   : > { %p34_p11 = scmp.ge.s32.totalorder %s32_s5, 8  ;;  %s39_s6 = sadd.s32 1, %s1555_s14 }
  0x13   : > { %p1350_p10 = pnand %p1349_p9, %p1630_p1  ;;  %p46_p12 = scmp.ne.s32.totalorder %s1555_s14, %s1551_s13 }
  0x14   : > { %s156_s26 = sshll.u32 %s1875_s1, 4  ;;  %p47_p13 = scmp.eq.s32.totalorder %s1567_s17, 0  ;;  %s157_s26 = int_to_ptr.hbm [resolvable:$true] %s156_s26 }
  0x15   : > { %1352 = dma.hbm_to_vmem [thread:$0]  (!%p1350_p10), %s157_s26, 2048, %s159_s29, [#allocation6], %s1570_s30, %s1570_s30, %s1571_s4  }
  0x16   : > { %s1885_s5 = smov (%p34_p11, %s32_s5), 0  ;;  %p1668_p0 = por %p47_p13, %p46_p12 }
  0x17   : > { %p1674_p3 = por %p1634_p2, %p46_p12  ;;  %s36_s9 = ssub.s32 %s1563_s16, %s1885_s5 }
  0x18   : > { %p1362_p5 = scmp.lt.s32.totalorder %s1567_s17, 8  ;;  %p37_p7 = scmp.eq.s32.totalorder %s36_s9, 0 }
  0x19   : > { %s178_s10 = sand.u32 1, %s1555_s14   ;;  %s1180_s19 = sshll.u32 %s1563_s16, 8 }
  0x1a   : > { %s974_s11 = sshll.u32 %s178_s10, 8  ;;  %s188_s26 = scalar_lea.hbm %s1866_s0, %s1180_s19 }
  0x1b   : > { %s1683_s18 = scalar_select %p37_p7, %s1555_s14, %s39_s6  }
  0x1c   : > { %s182_s28 = scalar_lea.vmem [#allocation2], %s974_s11  ;;  %s189_s21 = sshll.u32 %s188_s26, 4  ;;  %s190_s21 = int_to_ptr.hbm [resolvable:$true] %s189_s21 }
  0x1d   : > { %s191_s29 = sshll.u32 %s182_s28, 4  ;;  %p1354_p2 = pnand %p1362_p5, %p1668_p0  ;;  %s192_s29 = int_to_ptr.vmem [resolvable:$true] %s191_s29 }
  0x1e   : > { %s179_s30 = scalar_lea.sflag [#allocation3], %s178_s10  ;;  %s1572_s4 = smov 128  }
  0x1f   : > { %s1573_s1 = smov 8   ;;  %203 = sbr.rel (%p1653_p8) target bundleno = 335 (0x14f), region = 32 }
  0x20   : > { %1356 = dma.hbm_to_vmem [thread:$0]  (!%p1354_p2), %s190_s21, 4096, %s192_s29, %s179_s30, %s1572_s4, %s1572_s4, %s1573_s1  }
  0x21   : > { %s1694_s6 = sand.u32 (!%p1653_p8), 1, %s1551_s13  }
  0x22   : > { %s979_s9 = sshll.u32 (!%p1653_p8), %s1694_s6, 8  ;;  %s206_s11 = scalar_lea.sflag (!%p1653_p8), [#allocation3], %s1694_s6 }
  0x23   : > { %s1698_s19 = scalar_lea.vmem (!%p1653_p8), [#allocation2], %s979_s9 }
  0x24   : > { %1534 = dma.done.wait (%p1640_p4), %s206_s11, 4096  }
  0x25   : > { %1536 = vsyncadd (%p1640_p4), %s206_s11, 4294963200 }
  0x26   : > { %1538 = dma.done.wait (%p1630_p1), [#allocation6], 2048  }
  0x27   : > { %1540 = vsyncadd (%p1630_p1), [#allocation6], 4294965248  ;;  %v1220_v0 = vld [vmem:[#allocation5 + $0x38] sm:$0xff]  ;;  %v1219_v2 = vld [vmem:[#allocation5 + $0x30] sm:$0xff]  ;;  %s981_s22 = sshll.u32 %s1694_s6, 7  ;;  %s1229_s7 = sshll.u32 %s1559_s15, 7 }
  0x28   : > { %v1228_v1 = vld [vmem:[#allocation5 + $0x78] sm:$0xff]  ;;  %570 = vmatpush.bf16.msra.mxu0 %v1220_v0  ;;  %1325 = vmatpush.bf16.msra.mxu2 %v1220_v0  ;;  %v1227_v3 = vld [vmem:[#allocation5 + $0x70] sm:$0xff]  ;;  %v1218_v4 = vld [vmem:[#allocation5 + $0x28] sm:$0xff]  ;;  %s1782_s27 = scalar_lea.vmem [#allocation7], %s981_s22  ;;  %s857_s25 = scalar_lea.hbm %s1869_s3, %s1229_s7 }
  0x29   : > { %659 = vmatpush.bf16.msra.mxu1 %v1228_v1  ;;  %1333 = vmatpush.bf16.msra.mxu3 %v1228_v1  ;;  %v1226_v5 = vld [vmem:[#allocation5 + $0x68] sm:$0xff]  ;;  %v1217_v6 = vld [vmem:[#allocation5 + $0x20] sm:$0xff]  ;;  %v1216_v8 = vld [vmem:[#allocation5 + $0x18] sm:$0xff]  ;;  %s858_s26 = sshll.u32 %s1782_s27, 4  ;;  %s860_s28 = sshll.u32 %s857_s25, 4  ;;  %s859_s26 = int_to_ptr.vmem [resolvable:$true] %s858_s26  ;;  %s861_s28 = int_to_ptr.hbm [resolvable:$true] %s860_s28 }
  0x2a   : > { %v1225_v7 = vld [vmem:[#allocation5 + $0x60] sm:$0xff]  ;;  %v1224_v9 = vld [vmem:[#allocation5 + $0x58] sm:$0xff]  ;;  %v1215_v10 = vld [vmem:[#allocation5 + $0x10] sm:$0xff]  ;;  %s845_s15 = scalar_lea.sflag [#allocation4], %s1694_s6  ;;  %s1495_s29 = sshra.s32 %s861_s28, 4  ;;  %s1496_s29 = int_to_ptr.hbm [resolvable:$true] %s1495_s29 }
  0x2b   : > { %v1223_v11 = vld [vmem:[#allocation5 + $0x50] sm:$0xff]  ;;  %v1214_v12 = vld [vmem:[#allocation5 + $0x8] sm:$0xff]  ;;  %v1213_v14 = vld [vmem:[#allocation5] sm:$0xff]  ;;  %s1497_s21 = scalar_lea.hbm %s1496_s29, 128  ;;  %s1501_s9 = scalar_lea.hbm %s1869_s3, 1024 }
  0x2c   : > { %571 = vmatpush.bf16.msra.mxu0 %v1219_v2  ;;  %1326 = vmatpush.bf16.msra.mxu2 %v1219_v2  ;;  %v1222_v13 = vld [vmem:[#allocation5 + $0x48] sm:$0xff]  ;;  %v1221_v15 = vld [vmem:[#allocation5 + $0x40] sm:$0xff]  ;;  %v992_v28 = vld [vmem:[%s1698_s19 + $0x10] sm:$0xf]  ;;  %p1498_p1 = scmp.ne.s32.totalorder %s1496_s29, %s1497_s21  ;;  %p1502_p9 = scmp.lt.s32.totalorder %s1496_s29, %s1869_s3 }
  0x2d   : > { %660 = vmatpush.bf16.msra.mxu1 %v1227_v3  ;;  %1334 = vmatpush.bf16.msra.mxu3 %v1227_v3  ;;  %v984_v16 = vld [vmem:[%s1698_s19] sm:$0xf]  ;;  %v1182_v17 = vld [vmem:[%s1698_s19 + $0x4] sm:$0xf0]  ;;  %v1181_v20 = vld [vmem:[%s1698_s19 + $0x4] sm:$0xf]  ;;  %p1503_p10 = scmp.lt.s32.totalorder %s1501_s9, %s1497_s21 }
  0x2e   : > { %v1048_v18 = vld [vmem:[%s1698_s19 + $0x80] sm:$0xf]  ;;  %v1198_v19 = vld [vmem:[%s1698_s19 + $0x84] sm:$0xf0]  ;;  %v986_v21 = vld [vmem:[%s1698_s19 + $0x8] sm:$0xf0]  ;;  %v985_v24 = vor.u32 %v1182_v17, %v984_v16  ;;  %p1499_p4 = pnand %p1498_p1, %p1674_p3 }
  0x2f   : > { %v1197_v22 = vld [vmem:[%s1698_s19 + $0x84] sm:$0xf]  ;;  %v1050_v23 = vld [vmem:[%s1698_s19 + $0x88] sm:$0xf0]  ;;  %v1049_v25 = vor.u32 %v1198_v19, %v1048_v18  ;;  %v989_v26 = vor.u32 %v1181_v20, %v986_v21  ;;  %v1184_v29 = vld [vmem:[%s1698_s19 + $0x14] sm:$0xf0]  ;;  %p1504_p11 = por %p1503_p10, %p1502_p9 }
  0x30   : > { %572 = vmatpush.bf16.msra.mxu0 %v1218_v4  ;;  %1327 = vmatpush.bf16.msra.mxu2 %v1218_v4  ;;  %v1053_v27 = vor.u32 %v1197_v22, %v1050_v23  ;;  %v1056_v30 = vld [vmem:[%s1698_s19 + $0x90] sm:$0xf]  ;;  %v1200_v31 = vld [vmem:[%s1698_s19 + $0x94] sm:$0xf0]  ;;  %v1183_v32 = vld [vmem:[%s1698_s19 + $0x14] sm:$0xf]  ;;  %v993_v36 = vor.u32 %v1184_v29, %v992_v28  ;;  %p1500_p8 = pneg %p1499_p4 }
  0x31   : > { %661 = vmatpush.bf16.msra.mxu1 %v1226_v5  ;;  %1335 = vmatpush.bf16.msra.mxu3 %v1226_v5  ;;  %v994_v33 = vld [vmem:[%s1698_s19 + $0x18] sm:$0xf0]  ;;  %v1199_v34 = vld [vmem:[%s1698_s19 + $0x94] sm:$0xf]  ;;  %v1057_v37 = vor.u32 %v1200_v31, %v1056_v30  ;;  %v1000_v40 = vld [vmem:[%s1698_s19 + $0x20] sm:$0xf] }
  0x32   : > { %v1058_v35 = vld [vmem:[%s1698_s19 + $0x98] sm:$0xf0]  ;;  %v997_v38 = vor.u32 %v1183_v32, %v994_v33  ;;  %v1186_v41 = vld [vmem:[%s1698_s19 + $0x24] sm:$0xf0]  ;;  %v1064_v42 = vld [vmem:[%s1698_s19 + $0xa0] sm:$0xf]  ;;  %p1505_p12 = pnand %p1504_p11, %p1500_p8 }
  0x33   : > { %v1061_v39 = vor.u32 %v1199_v34, %v1058_v35  ;;  %v1202_v43 = vld [vmem:[%s1698_s19 + $0xa4] sm:$0xf0]  ;;  %v1185_v44 = vld [vmem:[%s1698_s19 + $0x24] sm:$0xf]  ;;  %v1002_v45 = vld [vmem:[%s1698_s19 + $0x28] sm:$0xf0]  ;;  %v1001_v48 = vor.u32 %v1186_v41, %v1000_v40 }
  0x34   : > { %573 = vmatpush.bf16.msra.mxu0 %v1217_v6  ;;  %1328 = vmatpush.bf16.msra.mxu2 %v1217_v6  ;;  %v1201_v46 = vld [vmem:[%s1698_s19 + $0xa4] sm:$0xf]  ;;  %v1066_v47 = vld [vmem:[%s1698_s19 + $0xa8] sm:$0xf0]  ;;  %v1065_v49 = vor.u32 %v1202_v43, %v1064_v42  ;;  %v1005_v50 = vor.u32 %v1185_v44, %v1002_v45  ;;  %v1008_v52 = vld [vmem:[%s1698_s19 + $0x30] sm:$0xf] }
  0x35   : > { %662 = vmatpush.bf16.msra.mxu1 %v1225_v7  ;;  %1336 = vmatpush.bf16.msra.mxu3 %v1225_v7  ;;  %v1069_v51 = vor.u32 %v1201_v46, %v1066_v47  ;;  %v1188_v53 = vld [vmem:[%s1698_s19 + $0x34] sm:$0xf0]  ;;  %v1072_v54 = vld [vmem:[%s1698_s19 + $0xb0] sm:$0xf]  ;;  %v1187_v56 = vld [vmem:[%s1698_s19 + $0x34] sm:$0xf] }
  0x36   : > { %v1204_v55 = vld [vmem:[%s1698_s19 + $0xb4] sm:$0xf0]  ;;  %v1010_v57 = vld [vmem:[%s1698_s19 + $0x38] sm:$0xf0]  ;;  %v1203_v58 = vld [vmem:[%s1698_s19 + $0xb4] sm:$0xf]  ;;  %v1009_v60 = vor.u32 %v1188_v53, %v1008_v52 }
  0x37   : > { %v1074_v59 = vld [vmem:[%s1698_s19 + $0xb8] sm:$0xf0]  ;;  %v1073_v61 = vor.u32 %v1204_v55, %v1072_v54  ;;  %v1013_v62 = vor.u32 %v1187_v56, %v1010_v57  ;;  %v1016_v0 = vld [vmem:[%s1698_s19 + $0x40] sm:$0xf]  ;;  %v1190_v1 = vld [vmem:[%s1698_s19 + $0x44] sm:$0xf0] }
  0x38   : > { %574 = vmatpush.bf16.msra.mxu0 %v1216_v8  ;;  %1329 = vmatpush.bf16.msra.mxu2 %v1216_v8  ;;  %v1077_v63 = vor.u32 %v1203_v58, %v1074_v59  ;;  %v1080_v2 = vld [vmem:[%s1698_s19 + $0xc0] sm:$0xf]  ;;  %v1206_v3 = vld [vmem:[%s1698_s19 + $0xc4] sm:$0xf0]  ;;  %v1189_v4 = vld [vmem:[%s1698_s19 + $0x44] sm:$0xf]  ;;  %v1017_v8 = vor.u32 %v1190_v1, %v1016_v0 }
  0x39   : > { %663 = vmatpush.bf16.msra.mxu1 %v1224_v9  ;;  %1337 = vmatpush.bf16.msra.mxu3 %v1224_v9  ;;  %v1018_v5 = vld [vmem:[%s1698_s19 + $0x48] sm:$0xf0]  ;;  %v1205_v6 = vld [vmem:[%s1698_s19 + $0xc4] sm:$0xf]  ;;  %v1081_v9 = vor.u32 %v1206_v3, %v1080_v2  ;;  %v1191_v16 = vld [vmem:[%s1698_s19 + $0x54] sm:$0xf] }
  0x3a   : > { %v1082_v7 = vld [vmem:[%s1698_s19 + $0xc8] sm:$0xf0]  ;;  %v1026_v17 = vld [vmem:[%s1698_s19 + $0x58] sm:$0xf0]  ;;  %v1207_v18 = vld [vmem:[%s1698_s19 + $0xd4] sm:$0xf] }
  0x3b   : > { %v1090_v19 = vld [vmem:[%s1698_s19 + $0xd8] sm:$0xf0]  ;;  %v1029_v22 = vor.u32 %v1191_v16, %v1026_v17  ;;  %v1193_v28 = vld [vmem:[%s1698_s19 + $0x64] sm:$0xf]  ;;  %v1034_v29 = vld [vmem:[%s1698_s19 + $0x68] sm:$0xf0] }
  0x3c   : > { %575 = vmatpush.bf16.msra.mxu0 %v1215_v10  ;;  %1330 = vmatpush.bf16.msra.mxu2 %v1215_v10  ;;  %v1021_v10 = vor.u32 %v1189_v4, %v1018_v5  ;;  %v1093_v23 = vor.u32 %v1207_v18, %v1090_v19  ;;  %v1209_v30 = vld [vmem:[%s1698_s19 + $0xe4] sm:$0xf]  ;;  %v1098_v31 = vld [vmem:[%s1698_s19 + $0xe8] sm:$0xf0]  ;;  %v1037_v34 = vor.u32 %v1193_v28, %v1034_v29  ;;  %v1195_v40 = vld [vmem:[%s1698_s19 + $0x74] sm:$0xf] }
  0x3d   : > { %664 = vmatpush.bf16.msra.mxu1 %v1223_v11  ;;  %1338 = vmatpush.bf16.msra.mxu3 %v1223_v11  ;;  %v1085_v11 = vor.u32 %v1205_v6, %v1082_v7  ;;  %v1101_v35 = vor.u32 %v1209_v30, %v1098_v31  ;;  %v1042_v41 = vld [vmem:[%s1698_s19 + $0x78] sm:$0xf0]  ;;  %v1211_v42 = vld [vmem:[%s1698_s19 + $0xf4] sm:$0xf] }
  0x3e   : > { %v1106_v43 = vld [vmem:[%s1698_s19 + $0xf8] sm:$0xf0]  ;;  %v1045_v46 = vor.u32 %v1195_v40, %v1042_v41 }
  0x3f   : > { %v1109_v47 = vor.u32 %v1211_v42, %v1106_v43 }
  0x40   : > { %576 = vmatpush.bf16.msra.mxu0 %v1214_v12  ;;  %1331 = vmatpush.bf16.msra.mxu2 %v1214_v12  ;;  %v1024_v12 = vld [vmem:[%s1698_s19 + $0x50] sm:$0xf] }
  0x41   : > { %665 = vmatpush.bf16.msra.mxu1 %v1222_v13  ;;  %1339 = vmatpush.bf16.msra.mxu3 %v1222_v13  ;;  %v1192_v13 = vld [vmem:[%s1698_s19 + $0x54] sm:$0xf0] }
  0x42   : > { %v1025_v20 = vor.u32 %v1192_v13, %v1024_v12 }
  0x44   : > { %577 = vmatpush.bf16.msra.mxu0 %v1213_v14  ;;  %1332 = vmatpush.bf16.msra.mxu2 %v1213_v14  ;;  %v1088_v14 = vld [vmem:[%s1698_s19 + $0xd0] sm:$0xf] }
  0x45   : > { %666 = vmatpush.bf16.msra.mxu1 %v1221_v15  ;;  %1340 = vmatpush.bf16.msra.mxu3 %v1221_v15  ;;  %v1208_v15 = vld [vmem:[%s1698_s19 + $0xd4] sm:$0xf0] }
  0x46   : > { %v1089_v21 = vor.u32 %v1208_v15, %v1088_v14 }
  0x47   : > { %578 = vmatmul.bf16.vlgmr.msra.gmra.mxu0 %v985_v24  ;;  %618 = vmatmul.bf16.vlgmr.msra.gmra.mxu2 %v1049_v25  ;;  %v1032_v24 = vld [vmem:[%s1698_s19 + $0x60] sm:$0xf]  ;;  %v1194_v25 = vld [vmem:[%s1698_s19 + $0x64] sm:$0xf0] }
  0x48   : > { %667 = vmatmul.bf16.vlgmr.msra.gmra.mxu1 %v989_v26  ;;  %707 = vmatmul.bf16.vlgmr.msra.gmra.mxu3 %v1053_v27  ;;  %v1096_v26 = vld [vmem:[%s1698_s19 + $0xe0] sm:$0xf]  ;;  %v1210_v27 = vld [vmem:[%s1698_s19 + $0xe4] sm:$0xf0]  ;;  %v1033_v32 = vor.u32 %v1194_v25, %v1032_v24 }
  0x49   : > { %v1097_v33 = vor.u32 %v1210_v27, %v1096_v26 }
  0x57   : > { %583 = vmatmul.bf16.gmra.mxu0 %v993_v36  ;;  %623 = vmatmul.bf16.gmra.mxu2 %v1057_v37  ;;  %v1040_v36 = vld [vmem:[%s1698_s19 + $0x70] sm:$0xf]  ;;  %v1196_v37 = vld [vmem:[%s1698_s19 + $0x74] sm:$0xf0] }
  0x58   : > { %672 = vmatmul.bf16.gmra.mxu1 %v997_v38  ;;  %712 = vmatmul.bf16.gmra.mxu3 %v1061_v39  ;;  %v1104_v38 = vld [vmem:[%s1698_s19 + $0xf0] sm:$0xf]  ;;  %v1212_v39 = vld [vmem:[%s1698_s19 + $0xf4] sm:$0xf0]  ;;  %v1041_v44 = vor.u32 %v1196_v37, %v1040_v36 }
  0x59   : > { %v1105_v45 = vor.u32 %v1212_v39, %v1104_v38 }
  0x67   : > { %588 = vmatmul.bf16.gmra.mxu0 %v1001_v48  ;;  %628 = vmatmul.bf16.gmra.mxu2 %v1065_v49  ;;  %v1775_v49 = vld [vmem:[%s1868_s2] ss:$0 sm:$0xff] }
  0x68   : > { %677 = vmatmul.bf16.gmra.mxu1 %v1005_v50  ;;  %717 = vmatmul.bf16.gmra.mxu3 %v1069_v51 }
  0x77   : > { %593 = vmatmul.bf16.gmra.mxu0 %v1009_v60  ;;  %633 = vmatmul.bf16.gmra.mxu2 %v1073_v61 }
  0x78   : > { %682 = vmatmul.bf16.gmra.mxu1 %v1013_v62  ;;  %722 = vmatmul.bf16.gmra.mxu3 %v1077_v63 }
  0x87   : > { %598 = vmatmul.bf16.gmra.mxu0 %v1017_v8  ;;  %638 = vmatmul.bf16.gmra.mxu2 %v1081_v9 }
  0x88   : > { %687 = vmatmul.bf16.gmra.mxu1 %v1021_v10  ;;  %727 = vmatmul.bf16.gmra.mxu3 %v1085_v11 }
  0x97   : > { %603 = vmatmul.bf16.gmra.mxu0 %v1025_v20  ;;  %643 = vmatmul.bf16.gmra.mxu2 %v1089_v21 }
  0x98   : > { %692 = vmatmul.bf16.gmra.mxu1 %v1029_v22  ;;  %732 = vmatmul.bf16.gmra.mxu3 %v1093_v23 }
  0xa7   : > { %608 = vmatmul.bf16.gmra.mxu0 %v1033_v32  ;;  %648 = vmatmul.bf16.gmra.mxu2 %v1097_v33 }
  0xa8   : > { %697 = vmatmul.bf16.gmra.mxu1 %v1037_v34  ;;  %737 = vmatmul.bf16.gmra.mxu3 %v1101_v35 }
  0xb7   : > { %613 = vmatmul.bf16.gmra.mxu0 %v1041_v44  ;;  %653 = vmatmul.bf16.gmra.mxu2 %v1105_v45 }
  0xb8   : > { %702 = vmatmul.bf16.gmra.mxu1 %v1045_v46  ;;  %742 = vmatmul.bf16.gmra.mxu3 %v1109_v47 }
  0xc4   : > { %v579_v48 = vpop.f32.mrf.mxu0 }
  0xc5   : > { %v668_v50 = vpop.f32.mrf.mxu1  ;;  %v580_v51 = vadd.f32 %v1775_v49, %v579_v48 }
  0xc7   : > { %v669_v55 = vadd.f32 %v668_v50, %v580_v51 }
  0xc9   : > { %v748_v60 = vmax.f32 %v669_v55, 0.0 }
  0xca   : > { %v619_v52 = vpop.f32.mrf.mxu2 }
  0xcb   : > { %v708_v53 = vpop.f32.mrf.mxu3  ;;  %v620_v58 = vadd.f32 %v1775_v49, %v619_v52 }
  0xcc   : > { %v581_v54 = vpop.f32.mrf.mxu0 }
  0xcd   : > { %v582_v56 = vadd.f32 %v1775_v49, %v581_v54  ;;  %v670_v57 = vpop.f32.mrf.mxu1  ;;  %v709_v63 = vadd.f32 %v708_v53, %v620_v58 }
  0xcf   : > { %v671_v59 = vadd.f32 %v670_v57, %v582_v56  ;;  %v764_v6 = vmax.f32 %v709_v63, 0.0 }
  0xd1   : > { %v749_v61 = vmax.f32 %v671_v59, 0.0 }
  0xd2   : > { %v621_v62 = vpop.f32.mrf.mxu2 }
  0xd3   : > { %v1233_v0 = vpack.c.bf16 %v749_v61, %v748_v60  ;;  %v622_v1 = vadd.f32 %v1775_v49, %v621_v62  ;;  %v710_v2 = vpop.f32.mrf.mxu3 }
  0xd4   : > { %v584_v3 = vpop.f32.mrf.mxu0 }
  0xd5   : > { %1234 = vst [vmem:[%s1782_s27] sm:$0xff] %v1233_v0   ;;  %v711_v4 = vadd.f32 %v710_v2, %v622_v1  ;;  %v673_v5 = vpop.f32.mrf.mxu1  ;;  %v585_v9 = vadd.f32 %v1775_v49, %v584_v3 }
  0xd7   : > { %v765_v7 = vmax.f32 %v711_v4, 0.0  ;;  %v674_v13 = vadd.f32 %v673_v5, %v585_v9 }
  0xd9   : > { %v1273_v8 = vpack.c.bf16 %v765_v7, %v764_v6  ;;  %v750_v18 = vmax.f32 %v674_v13, 0.0 }
  0xda   : > { %v624_v10 = vpop.f32.mrf.mxu2 }
  0xdb   : > { %1317 = vst [vmem:[%s1782_s27 + $0x40] sm:$0xff] %v1273_v8   ;;  %v713_v11 = vpop.f32.mrf.mxu3  ;;  %v625_v16 = vadd.f32 %v1775_v49, %v624_v10 }
  0xdc   : > { %v586_v12 = vpop.f32.mrf.mxu0 }
  0xdd   : > { %v587_v14 = vadd.f32 %v1775_v49, %v586_v12  ;;  %v675_v15 = vpop.f32.mrf.mxu1  ;;  %v714_v21 = vadd.f32 %v713_v11, %v625_v16 }
  0xdf   : > { %v676_v17 = vadd.f32 %v675_v15, %v587_v14  ;;  %v766_v28 = vmax.f32 %v714_v21, 0.0 }
  0xe1   : > { %v751_v19 = vmax.f32 %v676_v17, 0.0 }
  0xe2   : > { %v626_v20 = vpop.f32.mrf.mxu2 }
  0xe3   : > { %v1238_v22 = vpack.c.bf16 %v751_v19, %v750_v18  ;;  %v627_v23 = vadd.f32 %v1775_v49, %v626_v20  ;;  %v715_v24 = vpop.f32.mrf.mxu3 }
  0xe4   : > { %v589_v25 = vpop.f32.mrf.mxu0 }
  0xe5   : > { %1310 = vst [vmem:[%s1782_s27 + $0x8] sm:$0xff] %v1238_v22   ;;  %v716_v26 = vadd.f32 %v715_v24, %v627_v23  ;;  %v678_v27 = vpop.f32.mrf.mxu1  ;;  %v590_v31 = vadd.f32 %v1775_v49, %v589_v25 }
  0xe7   : > { %v767_v29 = vmax.f32 %v716_v26, 0.0  ;;  %v679_v35 = vadd.f32 %v678_v27, %v590_v31 }
  0xe9   : > { %v1278_v30 = vpack.c.bf16 %v767_v29, %v766_v28  ;;  %v752_v40 = vmax.f32 %v679_v35, 0.0 }
  0xea   : > { %v629_v32 = vpop.f32.mrf.mxu2 }
  0xeb   : > { %1318 = vst [vmem:[%s1782_s27 + $0x48] sm:$0xff] %v1278_v30   ;;  %v718_v33 = vpop.f32.mrf.mxu3  ;;  %v630_v38 = vadd.f32 %v1775_v49, %v629_v32 }
  0xec   : > { %v591_v34 = vpop.f32.mrf.mxu0 }
  0xed   : > { %v592_v36 = vadd.f32 %v1775_v49, %v591_v34  ;;  %v680_v37 = vpop.f32.mrf.mxu1  ;;  %v719_v43 = vadd.f32 %v718_v33, %v630_v38 }
  0xef   : > { %v681_v39 = vadd.f32 %v680_v37, %v592_v36  ;;  %v768_v51 = vmax.f32 %v719_v43, 0.0 }
  0xf1   : > { %v753_v41 = vmax.f32 %v681_v39, 0.0 }
  0xf2   : > { %v631_v42 = vpop.f32.mrf.mxu2 }
  0xf3   : > { %v1243_v44 = vpack.c.bf16 %v753_v41, %v752_v40  ;;  %v632_v45 = vadd.f32 %v1775_v49, %v631_v42  ;;  %v720_v46 = vpop.f32.mrf.mxu3 }
  0xf4   : > { %v594_v47 = vpop.f32.mrf.mxu0 }
  0xf5   : > { %1311 = vst [vmem:[%s1782_s27 + $0x10] sm:$0xff] %v1243_v44   ;;  %v721_v48 = vadd.f32 %v720_v46, %v632_v45  ;;  %v683_v50 = vpop.f32.mrf.mxu1  ;;  %v595_v54 = vadd.f32 %v1775_v49, %v594_v47 }
  0xf7   : > { %v769_v52 = vmax.f32 %v721_v48, 0.0  ;;  %v684_v58 = vadd.f32 %v683_v50, %v595_v54 }
  0xf9   : > { %v1283_v53 = vpack.c.bf16 %v769_v52, %v768_v51  ;;  %v754_v63 = vmax.f32 %v684_v58, 0.0 }
  0xfa   : > { %v634_v55 = vpop.f32.mrf.mxu2 }
  0xfb   : > { %1319 = vst [vmem:[%s1782_s27 + $0x50] sm:$0xff] %v1283_v53   ;;  %v723_v56 = vpop.f32.mrf.mxu3  ;;  %v635_v61 = vadd.f32 %v1775_v49, %v634_v55 }
  0xfc   : > { %v596_v57 = vpop.f32.mrf.mxu0 }
  0xfd   : > { %v597_v59 = vadd.f32 %v1775_v49, %v596_v57  ;;  %v685_v60 = vpop.f32.mrf.mxu1  ;;  %v724_v2 = vadd.f32 %v723_v56, %v635_v61 }
  0xff   : > { %v686_v62 = vadd.f32 %v685_v60, %v597_v59  ;;  %v770_v9 = vmax.f32 %v724_v2, 0.0 }
 0x101   : > { %v755_v0 = vmax.f32 %v686_v62, 0.0 }
 0x102   : > { %v636_v1 = vpop.f32.mrf.mxu2 }
 0x103   : > { %v1248_v3 = vpack.c.bf16 %v755_v0, %v754_v63  ;;  %v637_v4 = vadd.f32 %v1775_v49, %v636_v1  ;;  %v725_v5 = vpop.f32.mrf.mxu3 }
 0x104   : > { %v599_v6 = vpop.f32.mrf.mxu0 }
 0x105   : > { %1312 = vst [vmem:[%s1782_s27 + $0x18] sm:$0xff] %v1248_v3   ;;  %v726_v7 = vadd.f32 %v725_v5, %v637_v4  ;;  %v688_v8 = vpop.f32.mrf.mxu1  ;;  %v600_v12 = vadd.f32 %v1775_v49, %v599_v6 }
 0x107   : > { %v771_v10 = vmax.f32 %v726_v7, 0.0  ;;  %v689_v16 = vadd.f32 %v688_v8, %v600_v12 }
 0x109   : > { %v1288_v11 = vpack.c.bf16 %v771_v10, %v770_v9  ;;  %v756_v21 = vmax.f32 %v689_v16, 0.0 }
 0x10a   : > { %v639_v13 = vpop.f32.mrf.mxu2 }
 0x10b   : > { %1320 = vst [vmem:[%s1782_s27 + $0x58] sm:$0xff] %v1288_v11   ;;  %v728_v14 = vpop.f32.mrf.mxu3  ;;  %v640_v19 = vadd.f32 %v1775_v49, %v639_v13 }
 0x10c   : > { %v601_v15 = vpop.f32.mrf.mxu0 }
 0x10d   : > { %v602_v17 = vadd.f32 %v1775_v49, %v601_v15  ;;  %v690_v18 = vpop.f32.mrf.mxu1  ;;  %v729_v24 = vadd.f32 %v728_v14, %v640_v19 }
 0x10f   : > { %v691_v20 = vadd.f32 %v690_v18, %v602_v17  ;;  %v772_v31 = vmax.f32 %v729_v24, 0.0 }
 0x111   : > { %v757_v22 = vmax.f32 %v691_v20, 0.0 }
 0x112   : > { %v641_v23 = vpop.f32.mrf.mxu2 }
 0x113   : > { %v1253_v25 = vpack.c.bf16 %v757_v22, %v756_v21  ;;  %v642_v26 = vadd.f32 %v1775_v49, %v641_v23  ;;  %v730_v27 = vpop.f32.mrf.mxu3 }
 0x114   : > { %v604_v28 = vpop.f32.mrf.mxu0 }
 0x115   : > { %1313 = vst [vmem:[%s1782_s27 + $0x20] sm:$0xff] %v1253_v25   ;;  %v731_v29 = vadd.f32 %v730_v27, %v642_v26  ;;  %v693_v30 = vpop.f32.mrf.mxu1  ;;  %v605_v34 = vadd.f32 %v1775_v49, %v604_v28 }
 0x117   : > { %v773_v32 = vmax.f32 %v731_v29, 0.0  ;;  %v694_v38 = vadd.f32 %v693_v30, %v605_v34 }
 0x119   : > { %v1293_v33 = vpack.c.bf16 %v773_v32, %v772_v31  ;;  %v758_v43 = vmax.f32 %v694_v38, 0.0 }
 0x11a   : > { %v644_v35 = vpop.f32.mrf.mxu2 }
 0x11b   : > { %1321 = vst [vmem:[%s1782_s27 + $0x60] sm:$0xff] %v1293_v33   ;;  %v733_v36 = vpop.f32.mrf.mxu3  ;;  %v645_v41 = vadd.f32 %v1775_v49, %v644_v35 }
 0x11c   : > { %v606_v37 = vpop.f32.mrf.mxu0 }
 0x11d   : > { %v607_v39 = vadd.f32 %v1775_v49, %v606_v37  ;;  %v695_v40 = vpop.f32.mrf.mxu1  ;;  %v734_v46 = vadd.f32 %v733_v36, %v645_v41 }
 0x11f   : > { %v696_v42 = vadd.f32 %v695_v40, %v607_v39  ;;  %v774_v54 = vmax.f32 %v734_v46, 0.0 }
 0x121   : > { %v759_v44 = vmax.f32 %v696_v42, 0.0 }
 0x122   : > { %v646_v45 = vpop.f32.mrf.mxu2 }
 0x123   : > { %v1258_v47 = vpack.c.bf16 %v759_v44, %v758_v43  ;;  %v647_v48 = vadd.f32 %v1775_v49, %v646_v45  ;;  %v735_v50 = vpop.f32.mrf.mxu3 }
 0x124   : > { %v609_v51 = vpop.f32.mrf.mxu0 }
 0x125   : > { %1314 = vst [vmem:[%s1782_s27 + $0x28] sm:$0xff] %v1258_v47   ;;  %v736_v52 = vadd.f32 %v735_v50, %v647_v48  ;;  %v698_v53 = vpop.f32.mrf.mxu1  ;;  %v610_v57 = vadd.f32 %v1775_v49, %v609_v51 }
 0x127   : > { %v775_v55 = vmax.f32 %v736_v52, 0.0  ;;  %v699_v61 = vadd.f32 %v698_v53, %v610_v57 }
 0x129   : > { %v1298_v56 = vpack.c.bf16 %v775_v55, %v774_v54  ;;  %v760_v2 = vmax.f32 %v699_v61, 0.0 }
 0x12a   : > { %v649_v58 = vpop.f32.mrf.mxu2 }
 0x12b   : > { %1322 = vst [vmem:[%s1782_s27 + $0x68] sm:$0xff] %v1298_v56   ;;  %v738_v59 = vpop.f32.mrf.mxu3  ;;  %v650_v0 = vadd.f32 %v1775_v49, %v649_v58 }
 0x12c   : > { %v611_v60 = vpop.f32.mrf.mxu0 }
 0x12d   : > { %v612_v62 = vadd.f32 %v1775_v49, %v611_v60  ;;  %v700_v63 = vpop.f32.mrf.mxu1  ;;  %v739_v5 = vadd.f32 %v738_v59, %v650_v0 }
 0x12f   : > { %v701_v1 = vadd.f32 %v700_v63, %v612_v62  ;;  %v776_v12 = vmax.f32 %v739_v5, 0.0 }
 0x131   : > { %v761_v3 = vmax.f32 %v701_v1, 0.0 }
 0x132   : > { %v651_v4 = vpop.f32.mrf.mxu2 }
 0x133   : > { %v1263_v6 = vpack.c.bf16 %v761_v3, %v760_v2  ;;  %v652_v7 = vadd.f32 %v1775_v49, %v651_v4  ;;  %v740_v8 = vpop.f32.mrf.mxu3 }
 0x134   : > { %v614_v9 = vpop.f32.mrf.mxu0 }
 0x135   : > { %1315 = vst [vmem:[%s1782_s27 + $0x30] sm:$0xff] %v1263_v6   ;;  %v741_v10 = vadd.f32 %v740_v8, %v652_v7  ;;  %v703_v11 = vpop.f32.mrf.mxu1  ;;  %v615_v15 = vadd.f32 %v1775_v49, %v614_v9 }
 0x137   : > { %v777_v13 = vmax.f32 %v741_v10, 0.0  ;;  %v704_v19 = vadd.f32 %v703_v11, %v615_v15 }
 0x139   : > { %v1303_v14 = vpack.c.bf16 %v777_v13, %v776_v12  ;;  %v762_v24 = vmax.f32 %v704_v19, 0.0 }
 0x13a   : > { %v654_v16 = vpop.f32.mrf.mxu2 }
 0x13b   : > { %1323 = vst [vmem:[%s1782_s27 + $0x70] sm:$0xff] %v1303_v14   ;;  %v743_v17 = vpop.f32.mrf.mxu3  ;;  %v655_v22 = vadd.f32 %v1775_v49, %v654_v16 }
 0x13c   : > { %v616_v18 = vpop.f32.mrf.mxu0 }
 0x13d   : > { %v617_v20 = vadd.f32 %v1775_v49, %v616_v18  ;;  %v705_v21 = vpop.f32.mrf.mxu1  ;;  %v744_v27 = vadd.f32 %v743_v17, %v655_v22 }
 0x13f   : > { %v706_v23 = vadd.f32 %v705_v21, %v617_v20  ;;  %v778_v32 = vmax.f32 %v744_v27, 0.0 }
 0x141   : > { %v763_v25 = vmax.f32 %v706_v23, 0.0 }
 0x142   : > { %v656_v26 = vpop.f32.mrf.mxu2 }
 0x143   : > { %v1268_v28 = vpack.c.bf16 %v763_v25, %v762_v24  ;;  %v657_v29 = vadd.f32 %v1775_v49, %v656_v26  ;;  %v745_v30 = vpop.f32.mrf.mxu3 }
 0x145   : > { %1316 = vst [vmem:[%s1782_s27 + $0x38] sm:$0xff] %v1268_v28   ;;  %v746_v31 = vadd.f32 %v745_v30, %v657_v29 }
 0x147   : > { %v779_v33 = vmax.f32 %v746_v31, 0.0 }
 0x149   : > { %v1308_v34 = vpack.c.bf16 %v779_v33, %v778_v32 }
 0x14b   : > { %1324 = vst [vmem:[%s1782_s27 + $0x78] sm:$0xff] %v1308_v34  }
 0x14c   : > { %1508 = shalt.err (!%p1505_p12)
}
 0x14d   : > { %s1574_s6 = smov 64   ;;  %s1575_s1 = smov 4  }
 0x14e   : > { %1347 = dma.vmem_to_hbm [thread:$0]  (%p1674_p3), %s859_s26, 2048, %s861_s28, %s845_s15, %s1574_s6, %s1574_s6, %s1575_s1  }
 0x14f PF: > { %p1364_p13 = scmp.ge.s32.totalorder %s1567_s17, 2  ;;  %s875_s20 = sand.u32 1, %s1547_s12  }
 0x150   : > { %s876_s22 = scalar_lea.sflag [#allocation4], %s875_s20 }
 0x151   : > { %p1358_p0 = pnand %p1364_p13, %p1645_p6 }
 0x153   : > { %p1359_p5 = pneg %p1358_p0 }
 0x155   : > { %1542 = dma.done.wait (%p1359_p5), %s876_s22, 2048  }
 0x156   : > { %1544 = vsyncadd (%p1359_p5), %s876_s22, 4294965248  ;;  %s20_s17 = sadd.s32 1, %s1567_s17   ;;  %s1879_s12 = smov %s1551_s13 }
 0x157   : > { %p17_p7 = scmp.ge.s32.totalorder %s20_s17, 10   ;;  %s1880_s13 = smov %s1555_s14 }
 0x158   : > { %s1881_s14 = smov %s1683_s18  ;;  %s1882_s15 = smov %s1563_s16 }
 0x159   : > { %s1883_s16 = smov %s1885_s5  ;;  %19 = sbr.rel (!%p17_p7) target bundleno = 9 (0x9), region = 85 }
 0x15e   :  { %882 = vsyncpa [#allocation3], 1 }
 0x15f   :  { %884 = vsyncpa [#allocation3 + $0x1], 1 }
 0x160   :  { %885 = vsyncpa [#allocation6], 1 }
 0x161   :  { %886 = vsyncpa [#allocation4], 1 }
 0x162   :  { %888 = vsyncpa [#allocation4 + $0x1], 1 }

</bundles_post_ra>
